<compile_context>
chip_gen: v7x
topology: tpu7x:2x2x1
jax: 0.10.0
libtpu: 0.0.40
codegen_flags: <defaults>
</compile_context>

<pallas_src>
import jax
import jax.numpy as jnp
from jax.experimental import pallas as pl
from jax.experimental.pallas import tpu as pltpu


# ---------------------------------------------------------------------------
# Fused kernel: init transform + all GCN layers for one block of BB graphs.
# ---------------------------------------------------------------------------
def _make_fused_kernel(n_layers, bb, n_nodes, dims):
    """dims = [dim_embedding, hidden_0, ..., hidden_{L-1}]."""

    def kernel(x_ref, adj_ref, w0_ref, *refs):
        layer_refs = refs[: 2 * n_layers]          # (w_cat_0, b_cat_0, ...)
        o_ref = refs[2 * n_layers]

        # init_transform: (BB*N, in_feats) @ (in_feats, dim_emb), f32 accumulate.
        h = jnp.dot(x_ref[...], w0_ref[...], preferred_element_type=jnp.float32)

        for layer in range(n_layers):
            dout = dims[layer + 1]
            w_cat = layer_refs[2 * layer][...]      # (Din, 2*Dout) = [W | Wr]
            b_cat = layer_refs[2 * layer + 1][...]  # (1, 2*Dout)   = [b | br]

            # One MXU push covers both the GraphConv and residual projections.
            # A@(H@W) ordering kept since Dout <= Din for every layer here; for
            # layers with Dout > Din, (A@H)@W would use fewer FLOPs.
            hw_cat = jnp.dot(h, w_cat, preferred_element_type=jnp.float32)
            hw = hw_cat[:, :dout]                   # GraphConv projection
            hres = hw_cat[:, dout:]                 # residual projection

            # Sparse part: per-graph A @ (HW) (static unroll over BB graphs).
            msgs = []
            for g in range(bb):
                a = adj_ref[g].astype(jnp.float32)  # bf16 {0,1} -> f32, exact
                hw_g = hw[g * n_nodes:(g + 1) * n_nodes, :]
                msgs.append(jnp.dot(a, hw_g, preferred_element_type=jnp.float32))
            msg = msgs[0] if bb == 1 else jnp.concatenate(msgs, axis=0)

            gc = jnp.maximum(msg + b_cat[:, :dout], 0.0)    # GraphConv + ReLU
            res = jnp.maximum(hres + b_cat[:, dout:], 0.0)  # residual Linear + ReLU
            h = gc + res

        o_ref[...] = h.astype(o_ref.dtype)

    return kernel


def _choose_block_graphs(B, N):
    """Graphs per grid block: aim for >=128 sublane rows per block, but keep at
    least 2 parallel grid blocks when the batch allows (v7x has 2 TensorCores)."""
    bb = max(1, -(-128 // N)) if N < 128 else 1      # ceil(128 / N)
    bb = min(bb, B)
    if B >= 2:
        bb = max(1, min(bb, B // 2))
    while B % bb:                                    # must divide the batch
        bb -= 1
    return max(bb, 1)


# ---------------------------------------------------------------------------
# MolecularGCN forward (wrapper / glue)
# ---------------------------------------------------------------------------
def molecular_gcn_forward(x, adj, params, *, block_graphs=None):
    """x: (B, N, in_feats) node features, adj: (B, N, N) dense adjacency."""
    B, N, in_feats = x.shape
    dims = [params["w_init"].shape[1]] + [l["w"].shape[1] for l in params["layers"]]
    n_layers = len(params["layers"])
    out_feats = dims[-1]

    bb = block_graphs if block_graphs is not None else _choose_block_graphs(B, N)
    assert B % bb == 0

    # Lane-dense 2-D input slab (rows on sublanes, features on lanes).
    x_flat = x.reshape(B * N, in_feats)
    # {0,1} adjacency is exact in bf16 -> half the HBM/DMA traffic for A.
    adj_bf16 = adj.astype(jnp.bfloat16)

    # Concatenate GraphConv and residual weights: one dot per layer.
    w_cats = [jnp.concatenate([l["w"], l["wr"]], axis=1) for l in params["layers"]]
    b_cats = [jnp.concatenate([l["b"], l["br"]], axis=1) for l in params["layers"]]

    in_specs = [
        pl.BlockSpec((bb * N, in_feats), lambda i: (i, 0)),
        pl.BlockSpec((bb, N, N), lambda i: (i, 0, 0)),
        pl.BlockSpec(params["w_init"].shape, lambda i: (0, 0)),
    ]
    layer_args = []
    for w_cat, b_cat in zip(w_cats, b_cats):
        in_specs.append(pl.BlockSpec(w_cat.shape, lambda i: (0, 0)))
        in_specs.append(pl.BlockSpec(b_cat.shape, lambda i: (0, 0)))
        layer_args += [w_cat, b_cat]

    out = pl.pallas_call(
        _make_fused_kernel(n_layers, bb, N, dims),
        out_shape=jax.ShapeDtypeStruct((B * N, out_feats), jnp.float32),
        grid=(B // bb,),
        in_specs=in_specs,
        out_specs=pl.BlockSpec((bb * N, out_feats), lambda i: (i, 0)),
        compiler_params=pltpu.CompilerParams(dimension_semantics=("parallel",)),
    )(x_flat, adj_bf16, params["w_init"], *layer_args)

    # node_feats.view(batch_size, -1, output_feats)
    return out.reshape(B, -1, out_feats)


# ---------------------------------------------------------------------------
# Deterministic parameter construction (synthetic init, no checkpoint)
# ---------------------------------------------------------------------------
def make_params(key, in_feats, dim_embedding, hidden_feats, padding=True):
    n_layers = len(hidden_feats)
    keys = jax.random.split(key, 1 + 4 * n_layers)

    # init_transform: nn.Linear(in_feats, dim_embedding, bias=False); we store W^T.
    w_init = jax.random.normal(keys[0], (in_feats, dim_embedding), jnp.float32)
    w_init = w_init * (1.0 / jnp.sqrt(in_feats))
    if padding:
        # weight[-1].fill_(0) -> last OUTPUT embedding dim zero -> last column of W^T.
        w_init = w_init.at[:, -1].set(0.0)

    layers = []
    din = dim_embedding
    for li, dout in enumerate(hidden_feats):
        k = keys[1 + 4 * li: 1 + 4 * (li + 1)]
        scale = 1.0 / jnp.sqrt(din)
        layers.append(
            dict(
                w=jax.random.normal(k[0], (din, dout), jnp.float32) * scale,   # GraphConv W
                b=jax.random.normal(k[1], (1, dout), jnp.float32) * 0.01,      # GraphConv b
                wr=jax.random.normal(k[2], (din, dout), jnp.float32) * scale,  # residual W
                br=jax.random.normal(k[3], (1, dout), jnp.float32) * 0.01,     # residual b
            )
        )
        din = dout
    return dict(w_init=w_init, layers=layers)


# Pure-JAX reference for a sanity check.
def reference_forward(x, adj, params):
    B, N, _ = x.shape
    h = x @ params["w_init"]
    for layer in params["layers"]:
        gc = jnp.maximum(jnp.einsum("bij,bjd->bid", adj, h @ layer["w"]) + layer["b"], 0.0)
        res = jnp.maximum(h @ layer["wr"] + layer["br"], 0.0)
        h = gc + res
    return h.reshape(B, -1, params["layers"][-1]["w"].shape[1])


if __name__ == "__main__":
    # Small shapes consistent with the module's forward:
    #   batch of 2 graphs, 16 (padded) nodes each, 8 input atom features,
    #   dim_embedding=32, hidden_feats=[32, 32].
    B, N, IN_FEATS = 2, 16, 8
    DIM_EMB = 32
    HIDDEN_FEATS = [32, 32]

    key = jax.random.PRNGKey(0)
    kx, ka, kp = jax.random.split(key, 3)

    x = jax.random.normal(kx, (B, N, IN_FEATS), jnp.float32)
    # random symmetric {0,1} adjacency with self loops
    a = (jax.random.uniform(ka, (B, N, N)) > 0.7).astype(jnp.float32)
    adj = jnp.clip(a + jnp.transpose(a, (0, 2, 1)) + jnp.eye(N)[None], 0.0, 1.0)

    params = make_params(kp, IN_FEATS, DIM_EMB, HIDDEN_FEATS, padding=True)

    out = molecular_gcn_forward(x, adj, params)
    out = jax.block_until_ready(out)

    ref = reference_forward(x, adj, params)
    assert out.shape == (B, N, HIDDEN_FEATS[-1])
    assert jnp.allclose(out, ref, atol=1e-4, rtol=1e-4)

    print("KERNEL_OK")
</pallas_src>

<mosaic_0001>
module attributes {stable_mosaic.version = 11 : i64} {
  func.func @kernel(%arg0: i32, %arg1: memref<16x8xf32, #tpu.memory_space<vmem>>, %arg2: memref<1x16x16xbf16, #tpu.memory_space<vmem>>, %arg3: memref<8x32xf32, #tpu.memory_space<vmem>>, %arg4: memref<32x64xf32, #tpu.memory_space<vmem>>, %arg5: memref<1x64xf32, #tpu.memory_space<vmem>>, %arg6: memref<32x64xf32, #tpu.memory_space<vmem>>, %arg7: memref<1x64xf32, #tpu.memory_space<vmem>>, %arg8: memref<16x32xf32, #tpu.memory_space<vmem>>) attributes {dimension_semantics = [#tpu.dimension_semantics<parallel>], iteration_bounds = array<i64: 2>, scalar_prefetch = 0 : i64, scratch_operands = 0 : i64, tpu.core_type = #tpu.core_type<tc>, window_params = [{transform_indices = @transform_0, window_bounds = array<i64: 16, 8>}, {transform_indices = @transform_1, window_bounds = array<i64: 1, 16, 16>}, {pipeline_mode = #tpu.pipeline_mode<synchronous>, transform_indices = @transform_2, window_bounds = array<i64: 8, 32>}, {pipeline_mode = #tpu.pipeline_mode<synchronous>, transform_indices = @transform_3, window_bounds = array<i64: 32, 64>}, {pipeline_mode = #tpu.pipeline_mode<synchronous>, transform_indices = @transform_4, window_bounds = array<i64: 1, 64>}, {pipeline_mode = #tpu.pipeline_mode<synchronous>, transform_indices = @transform_5, window_bounds = array<i64: 32, 64>}, {pipeline_mode = #tpu.pipeline_mode<synchronous>, transform_indices = @transform_6, window_bounds = array<i64: 1, 64>}, {transform_indices = @transform_7, window_bounds = array<i64: 16, 32>}]} {
    %c0 = arith.constant 0 : index
    %c0_0 = arith.constant 0 : index
    %0 = vector.load %arg1[%c0, %c0_0] : memref<16x8xf32, #tpu.memory_space<vmem>>, vector<16x8xf32>
    %c0_1 = arith.constant 0 : index
    %c0_2 = arith.constant 0 : index
    %1 = vector.load %arg3[%c0_1, %c0_2] : memref<8x32xf32, #tpu.memory_space<vmem>>, vector<8x32xf32>
    %cst = arith.constant dense<0.000000e+00> : vector<16x32xf32>
    %2 = tpu.matmul %0, %1, %cst {dimension_numbers = #tpu.dot_dimension_numbers<[1], [0], [0], [1], [0, 0, 1, 1], [], []>} : vector<16x8xf32>, vector<8x32xf32>, vector<16x32xf32> -> vector<16x32xf32>
    %c0_3 = arith.constant 0 : index
    %c0_4 = arith.constant 0 : index
    %3 = vector.load %arg4[%c0_3, %c0_4] : memref<32x64xf32, #tpu.memory_space<vmem>>, vector<32x64xf32>
    %c0_5 = arith.constant 0 : index
    %c0_6 = arith.constant 0 : index
    %4 = vector.load %arg5[%c0_5, %c0_6] : memref<1x64xf32, #tpu.memory_space<vmem>>, vector<1x64xf32>
    %cst_7 = arith.constant dense<0.000000e+00> : vector<16x64xf32>
    %5 = tpu.matmul %2, %3, %cst_7 {dimension_numbers = #tpu.dot_dimension_numbers<[1], [0], [0], [1], [0, 0, 1, 1], [], []>} : vector<16x32xf32>, vector<32x64xf32>, vector<16x64xf32> -> vector<16x64xf32>
    %6 = vector.extract_strided_slice %5 {offsets = [0, 0], sizes = [16, 32], strides = [1, 1]} : vector<16x64xf32> to vector<16x32xf32>
    %7 = vector.extract_strided_slice %5 {offsets = [0, 32], sizes = [16, 32], strides = [1, 1]} : vector<16x64xf32> to vector<16x32xf32>
    %c0_8 = arith.constant 0 : index
    %c0_9 = arith.constant 0 : index
    %c0_10 = arith.constant 0 : index
    %8 = vector.load %arg2[%c0_8, %c0_9, %c0_10] : memref<1x16x16xbf16, #tpu.memory_space<vmem>>, vector<1x16x16xbf16>
    %9 = vector.shape_cast %8 : vector<1x16x16xbf16> to vector<16x16xbf16>
    %10 = arith.extf %9 : vector<16x16xbf16> to vector<16x16xf32>
    %cst_11 = arith.constant dense<0.000000e+00> : vector<16x32xf32>
    %11 = tpu.matmul %10, %6, %cst_11 {dimension_numbers = #tpu.dot_dimension_numbers<[1], [0], [0], [1], [0, 0, 1, 1], [], []>} : vector<16x16xf32>, vector<16x32xf32>, vector<16x32xf32> -> vector<16x32xf32>
    %12 = vector.extract_strided_slice %4 {offsets = [0, 0], sizes = [1, 32], strides = [1, 1]} : vector<1x64xf32> to vector<1x32xf32>
    %13 = vector.broadcast %12 : vector<1x32xf32> to vector<16x32xf32>
    %14 = arith.addf %11, %13 : vector<16x32xf32>
    %cst_12 = arith.constant 0.000000e+00 : f32
    %15 = vector.broadcast %cst_12 : f32 to vector<16x32xf32>
    %16 = arith.maximumf %14, %15 : vector<16x32xf32>
    %17 = vector.extract_strided_slice %4 {offsets = [0, 32], sizes = [1, 32], strides = [1, 1]} : vector<1x64xf32> to vector<1x32xf32>
    %18 = vector.broadcast %17 : vector<1x32xf32> to vector<16x32xf32>
    %19 = arith.addf %7, %18 : vector<16x32xf32>
    %cst_13 = arith.constant 0.000000e+00 : f32
    %20 = vector.broadcast %cst_13 : f32 to vector<16x32xf32>
    %21 = arith.maximumf %19, %20 : vector<16x32xf32>
    %22 = arith.addf %16, %21 : vector<16x32xf32>
    %c0_14 = arith.constant 0 : index
    %c0_15 = arith.constant 0 : index
    %23 = vector.load %arg6[%c0_14, %c0_15] : memref<32x64xf32, #tpu.memory_space<vmem>>, vector<32x64xf32>
    %c0_16 = arith.constant 0 : index
    %c0_17 = arith.constant 0 : index
    %24 = vector.load %arg7[%c0_16, %c0_17] : memref<1x64xf32, #tpu.memory_space<vmem>>, vector<1x64xf32>
    %cst_18 = arith.constant dense<0.000000e+00> : vector<16x64xf32>
    %25 = tpu.matmul %22, %23, %cst_18 {dimension_numbers = #tpu.dot_dimension_numbers<[1], [0], [0], [1], [0, 0, 1, 1], [], []>} : vector<16x32xf32>, vector<32x64xf32>, vector<16x64xf32> -> vector<16x64xf32>
    %26 = vector.extract_strided_slice %25 {offsets = [0, 0], sizes = [16, 32], strides = [1, 1]} : vector<16x64xf32> to vector<16x32xf32>
    %27 = vector.extract_strided_slice %25 {offsets = [0, 32], sizes = [16, 32], strides = [1, 1]} : vector<16x64xf32> to vector<16x32xf32>
    %c0_19 = arith.constant 0 : index
    %c0_20 = arith.constant 0 : index
    %c0_21 = arith.constant 0 : index
    %28 = vector.load %arg2[%c0_19, %c0_20, %c0_21] : memref<1x16x16xbf16, #tpu.memory_space<vmem>>, vector<1x16x16xbf16>
    %29 = vector.shape_cast %28 : vector<1x16x16xbf16> to vector<16x16xbf16>
    %30 = arith.extf %29 : vector<16x16xbf16> to vector<16x16xf32>
    %cst_22 = arith.constant dense<0.000000e+00> : vector<16x32xf32>
    %31 = tpu.matmul %30, %26, %cst_22 {dimension_numbers = #tpu.dot_dimension_numbers<[1], [0], [0], [1], [0, 0, 1, 1], [], []>} : vector<16x16xf32>, vector<16x32xf32>, vector<16x32xf32> -> vector<16x32xf32>
    %32 = vector.extract_strided_slice %24 {offsets = [0, 0], sizes = [1, 32], strides = [1, 1]} : vector<1x64xf32> to vector<1x32xf32>
    %33 = vector.broadcast %32 : vector<1x32xf32> to vector<16x32xf32>
    %34 = arith.addf %31, %33 : vector<16x32xf32>
    %cst_23 = arith.constant 0.000000e+00 : f32
    %35 = vector.broadcast %cst_23 : f32 to vector<16x32xf32>
    %36 = arith.maximumf %34, %35 : vector<16x32xf32>
    %37 = vector.extract_strided_slice %24 {offsets = [0, 32], sizes = [1, 32], strides = [1, 1]} : vector<1x64xf32> to vector<1x32xf32>
    %38 = vector.broadcast %37 : vector<1x32xf32> to vector<16x32xf32>
    %39 = arith.addf %27, %38 : vector<16x32xf32>
    %cst_24 = arith.constant 0.000000e+00 : f32
    %40 = vector.broadcast %cst_24 : f32 to vector<16x32xf32>
    %41 = arith.maximumf %39, %40 : vector<16x32xf32>
    %42 = arith.addf %36, %41 : vector<16x32xf32>
    %c0_25 = arith.constant 0 : index
    %c0_26 = arith.constant 0 : index
    %43 = vector.load %arg8[%c0_25, %c0_26] : memref<16x32xf32, #tpu.memory_space<vmem>>, vector<16x32xf32>
    tpu.vector_store %arg8[%c0_25, %c0_26], %42 {strides = array<i32>} : memref<16x32xf32, #tpu.memory_space<vmem>>, vector<16x32xf32>,
    return
  }
  func.func @transform_0(%arg0: i32) -> (i32, i32) {
    %c0_i32 = arith.constant 0 : i32
    %c0_i32_0 = arith.constant 0 : i32
    return %arg0, %c0_i32 : i32, i32
  }
  func.func @transform_1(%arg0: i32) -> (i32, i32, i32) {
    %c0_i32 = arith.constant 0 : i32
    %c0_i32_0 = arith.constant 0 : i32
    %c0_i32_1 = arith.constant 0 : i32
    return %arg0, %c0_i32, %c0_i32_0 : i32, i32, i32
  }
  func.func @transform_2(%arg0: i32) -> (i32, i32) {
    %c0_i32 = arith.constant 0 : i32
    %c0_i32_0 = arith.constant 0 : i32
    %c0_i32_1 = arith.constant 0 : i32
    return %c0_i32, %c0_i32_0 : i32, i32
  }
  func.func @transform_3(%arg0: i32) -> (i32, i32) {
    %c0_i32 = arith.constant 0 : i32
    %c0_i32_0 = arith.constant 0 : i32
    %c0_i32_1 = arith.constant 0 : i32
    return %c0_i32, %c0_i32_0 : i32, i32
  }
  func.func @transform_4(%arg0: i32) -> (i32, i32) {
    %c0_i32 = arith.constant 0 : i32
    %c0_i32_0 = arith.constant 0 : i32
    %c0_i32_1 = arith.constant 0 : i32
    return %c0_i32, %c0_i32_0 : i32, i32
  }
  func.func @transform_5(%arg0: i32) -> (i32, i32) {
    %c0_i32 = arith.constant 0 : i32
    %c0_i32_0 = arith.constant 0 : i32
    %c0_i32_1 = arith.constant 0 : i32
    return %c0_i32, %c0_i32_0 : i32, i32
  }
  func.func @transform_6(%arg0: i32) -> (i32, i32) {
    %c0_i32 = arith.constant 0 : i32
    %c0_i32_0 = arith.constant 0 : i32
    %c0_i32_1 = arith.constant 0 : i32
    return %c0_i32, %c0_i32_0 : i32, i32
  }
  func.func @transform_7(%arg0: i32) -> (i32, i32) {
    %c0_i32 = arith.constant 0 : i32
    %c0_i32_0 = arith.constant 0 : i32
    return %arg0, %c0_i32 : i32, i32
  }
}

</mosaic_0001>

<bundles_post_ra>
// kernel: tpu_custom_call.1
= control target key start
LH: loop header
LB: loop body
LE: loop exit
PB: predicated region body
PF: predicated region fallthrough
CT: control target
= control target key end

     0   :  { %12 = vsyncpa [#allocation3], 0  ;;  %s1479_s0 = inlined_call_operand.vmem [shape: f32[32,8], index: 0, kind: input, shape index: {}]   ;;  %s1480_s1 = inlined_call_operand.vmem [shape: bf16[2,16,16], index: 1, kind: input, shape index: {}]   ;;  %s1481_s2 = inlined_call_operand.hbm [shape: f32[8,32], index: 2, kind: input, shape index: {}]   ;;  %s1482_s3 = inlined_call_operand.vmem [shape: f32[32,64], index: 3, kind: input, shape index: {}]   ;;  %s1483_s4 = inlined_call_operand.vmem [shape: f32[1,64], index: 4, kind: input, shape index: {}]   ;;  %s1484_s5 = inlined_call_operand.hbm [shape: f32[32,64], index: 5, kind: input, shape index: {}]   ;;  %s1485_s6 = inlined_call_operand.vmem [shape: f32[1,64], index: 6, kind: input, shape index: {}]   ;;  %s1486_s7 = inlined_call_operand.hbm [shape: f32[32,32], index: 7, kind: output, shape index: {}]  }
   0x1   :  { %13 = vsyncpa [#allocation6], 0 }
   0x2   :  { %14 = vsyncpa [#allocation4], 0 }
   0x3   :  { %16 = vsyncpa [#allocation4 + $0x1], 0  ;;  %s1268_s24 = smov 0   ;;  %s1270_s25 = smov 0  }
   0x4   :  { %s1272_s26 = smov 0   ;;  %s1274_s27 = smov 0  }
   0x5 LB: > { %s1289_s28 = sadd.s32 4294967295, %s1218_s27   ;;  %s903_s29 = sadd.s32 4294967294, %s1218_s27   ;;  %s1218_s27 = sphi %s1274_s27, %s1504_s27   ;;  %s1214_s26 = sphi %s1272_s26, %s1503_s26   ;;  %s1210_s25 = sphi %s1270_s25, %s1502_s25   ;;  %s1206_s24 = sphi %s1268_s24, %s1501_s24  }
   0x6   : > { %s1293_s30 = sadd.s32 1, %s1218_s27   ;;  %s186_s8 = sadd.s32 1, %s1214_s26 }
   0x7   : > { %s183_s9 = ssub.s32 %s1218_s27, %s1293_s30  ;;  %p196_p0 = scmp.ne.s32.totalorder %s1214_s26, %s1210_s25 }
   0x8   : > { %p184_p1 = scmp.eq.s32.totalorder %s183_s9, 0  ;;  %p197_p2 = scmp.eq.s32.totalorder %s1289_s28, 1 }
   0x9   : > { %p202_p3 = scmp.ne.s32.totalorder %s1210_s25, %s1206_s24  ;;  %p203_p4 = scmp.eq.s32.totalorder %s903_s29, 1 }
   0xa   : > { %s1304_s10 = scalar_select %p184_p1, %s1214_s26, %s186_s8  }
   0xb   : > { %p1306_p5 = por %p197_p2, %p196_p0  ;;  %p1310_p6 = por %p203_p4, %p202_p3 }
   0xc   : > { %p904_p7 = scmp.ge.s32.totalorder %s1218_s27, 1  ;;  %p210_p8 = scmp.lt.s32.totalorder %s1218_s27, 3 }
   0xd   : > { %s1490_s11 = scalar_select %p1306_p5, 1, 0 }
   0xe   : > { %s1491_s12 = scalar_select %p1310_p6, 1, 0 }
   0xf   : > { %p1487_p9 = scmp.eq.s32.totalorder %s1289_s28, 0  ;;  %p1317_p10 = pnand %p904_p7, %p210_p8 }
  0x10   : > { %s1220_s14 = smov [#allocation2]   ;;  %s1221_s16 = smov [#allocation5]  }
  0x11   : > { %s1492_s13 = scalar_select %p1317_p10, 1, 0 }
  0x12   : > { %s223_s15 = sshll.u32 %s1220_s14, 4  ;;  %p1037_p11 = pneg %p1317_p10  ;;  %s224_s15 = int_to_ptr.vmem [resolvable:$true] %s223_s15 }
  0x13   : > { %s239_s17 = sshll.u32 %s1221_s16, 4  ;;  %s1092_s21 = scalar_lea.hbm %s1481_s2, 128  ;;  %s1329_s17 = int_to_ptr.vmem [resolvable:$true] %s239_s17 }
  0x14   : > { %p1325_p12 = pnand %p1487_p9, %p1037_p11  ;;  %p1093_p13 = scmp.ne.s32.totalorder %s1481_s2, %s1092_s21 }
  0x15   : > { %p1099_p3 = scmp.lt.u32.totalorder %s1092_s21, %s1481_s2 }
  0x16   : > { %p1094_p0 = pneg %p1325_p12 }
  0x18   : > { %p1095_p1 = pnand %p1094_p0, %p1093_p13 }
  0x1a   : > { %p1096_p2 = pneg %p1095_p1 }
  0x1c   : > { %p1101_p4 = pnand %p1099_p3, %p1096_p2 }
  0x1e   : > { %1104 = shalt.err (!%p1101_p4)
}
  0x1f   : > { %s1105_s9 = scalar_lea.vmem %s224_s15, 128  ;;  %p1113_p9 = scmp.lt.s32.totalorder %s224_s15, %s224_s15 }
  0x20   : > { %p1106_p7 = scmp.ne.s32.totalorder %s224_s15, %s1105_s9  ;;  %p1114_p6 = scmp.lt.s32.totalorder %s1105_s9, %s1105_s9 }
  0x22   : > { %p1108_p8 = pnand %p1106_p7, %p1094_p0  ;;  %p1115_p5 = por %p1114_p6, %p1113_p9 }
  0x24   : > { %p1109_p11 = pneg %p1108_p8 }
  0x26   : > { %p1116_p10 = pnand %p1115_p5, %p1109_p11 }
  0x28   : > { %1119 = shalt.err (!%p1116_p10)
}
  0x29   : > { %1040 = dma.hbm_to_vmem [thread:$0]  (!%p1325_p12), %s1481_s2, 128, %s224_s15, [#allocation3]  }
  0x2a   : > { %s1120_s21 = scalar_lea.hbm %s1484_s5, 512 }
  0x2b   : > { %p1121_p13 = scmp.ne.s32.totalorder %s1484_s5, %s1120_s21  ;;  %p1127_p9 = scmp.lt.u32.totalorder %s1120_s21, %s1484_s5 }
  0x2d   : > { %p1123_p6 = pnand %p1121_p13, %p1094_p0 }
  0x2f   : > { %p1124_p5 = pneg %p1123_p6 }
  0x31   : > { %p1129_p10 = pnand %p1127_p9, %p1124_p5 }
  0x33   : > { %1132 = shalt.err (!%p1129_p10)
}
  0x34   : > { %s1133_s15 = scalar_lea.vmem %s1329_s17, 512  ;;  %p1141_p4 = scmp.lt.s32.totalorder %s1329_s17, %s1329_s17 }
  0x35   : > { %p1134_p1 = scmp.ne.s32.totalorder %s1329_s17, %s1133_s15  ;;  %p1142_p7 = scmp.lt.s32.totalorder %s1133_s15, %s1133_s15 }
  0x37   : > { %p1136_p2 = pnand %p1134_p1, %p1094_p0  ;;  %p1143_p8 = por %p1142_p7, %p1141_p4 }
  0x39   : > { %p1137_p3 = pneg %p1136_p2 }
  0x3b   : > { %p1144_p11 = pnand %p1143_p8, %p1137_p3 }
  0x3d   : > { %1147 = shalt.err (!%p1144_p11)
}
  0x3e   : > { %s1222_s9 = smov 128   ;;  %s1223_s14 = smov 8  }
  0x3f   : > { %1043 = dma.hbm_to_vmem [thread:$0]  (!%p1325_p12), %s1484_s5, 512, %s1329_s17, [#allocation6], %s1222_s9, %s1222_s9, %s1223_s14  }
  0x40   : > { %p1494_p13 = scmp.ne.s32.totalorder %s1492_s13, 0 }
  0x41   : > { %p1495_p0 = scmp.eq.s32.totalorder (!%p1494_p13), %s1289_s28, 0 }
  0x42   : > { %275 = sbr.rel (%p1494_p13) target bundleno = 1191 (0x4a7), region = 48 }
  0x49   : > { %1193 = dma.done.wait (%p1495_p0), [#allocation3], 128   ;;  %p1496_p6 = pmov %p1495_p0 }
  0x4a   : > { %p1497_p5 = pmov %p1495_p0 }
  0x4b   : > { %1195 = vsyncadd (%p1496_p6), [#allocation3], 4294967168 }
  0x4c   : > { %1197 = dma.done.wait (%p1497_p5), [#allocation6], 512   ;;  %p1498_p9 = pmov %p1495_p0 }
  0x4d   : > { %s912_s18 = sshll.u32 %s1289_s28, 1  ;;  %vm331_vm0 = vcmask 64512   ;;  %v330_v0 = vld [vmem:[#allocation2] sm:$0xff]  ;;  %v414_v4 = vld [vmem:[%s1482_s3 + $0x8] sm:$0xff]  ;;  %v415_v5 = vld [vmem:[%s1482_s3 + $0x10] sm:$0xff]  ;;  %vm418_vm1 = vcmask 261120  }
  0x4e   : > { %1199 = vsyncadd (%p1498_p9), [#allocation6], 4294966784  ;;  %p317_p10 = scmp.lt.s32.totalorder %s912_s18, 3  ;;  %962 = vmatprep.subr.mxu0 %v330_v0  ;;  %v413_v3 = vld [vmem:[%s1482_s3] sm:$0xff]  ;;  %v416_v7 = vld [vmem:[%s1482_s3 + $0x18] sm:$0xff]  ;;  %p322_p12 = scmp.lt.s32.totalorder %s1289_s28, 1 }
  0x4f   : > { %963 = vmatpush3.msra.mxu0 %v330_v0  ;;  %v1003_v6 = vpack.c.bf16 %v414_v4, %v413_v3  ;;  %v1007_v8 = vpack.c.bf16 %v416_v7, %v415_v5  ;;  %vm510_vm2 = vcmask 130048   ;;  %v920_v13 = vld [vmem:[%s1483_s4] ss:$0 sm:$0xff]  ;;  %s1224_s23 = smov 96   ;;  %v608_v22 = vld [vmem:[#allocation5] sm:$0xff]  ;;  %v609_v23 = vld [vmem:[#allocation5 + $0x8] sm:$0xff] }
  0x50   : > { %s1506_s18 = smov (!%p317_p10, %s912_s18), 3  ;;  %v1015_v24 = vpack.c.bf16 %v609_v23, %v608_v22  ;;  %v610_v25 = vld [vmem:[#allocation5 + $0x10] sm:$0xff]  ;;  %v611_v26 = vld [vmem:[#allocation5 + $0x18] sm:$0xff]  ;;  %s313_s15 = sand.u32 1, %s1210_s25  }
  0x51   : > { %s913_s17 = sshll.u32 %s1506_s18, 3  ;;  %1004 = vmatprep.subr.bf16.mxu1 %v1003_v6  ;;  %v1019_v27 = vpack.c.bf16 %v611_v26, %v610_v25  ;;  %v925_v38 = vld [vmem:[%s1485_s6] ss:$0 sm:$0xff]  ;;  %s911_s9 = sshll.u32 %s313_s15, 4 }
  0x52   : > { %s320_s21 = scalar_lea.vmem %s1479_s0, %s913_s17  ;;  %1006 = vmatpush3.bf16.msra.mxu1 %v1003_v6  ;;  %s934_s14 = sshll.u32 %s1289_s28, 8 }
  0x53   : > { %v328_v1 = vld [vmem:[%s320_s21] sm:$0xff]  ;;  %v329_v2 = vld [vmem:[%s320_s21 + $0x8] sm:$0xff]  ;;  %1008 = vmatprep.subr.bf16.mxu1 %v1007_v8  ;;  %s323_s19 = scalar_select %p322_p12, %s1289_s28, 1 }
  0x54   : > { %964 = vmatprep.mubr.msk.f32.mxu0 %vm331_vm0, %v328_v1  ;;  %s315_s16 = scalar_lea.vmem [#allocation7], %s911_s9  ;;  %s1432_s13 = scalar_lea.hbm %s1486_s7, %s934_s14 }
  0x55   : > { %965 = vmatmul.mubr.msk.f32.vlgmr.msra.gmra.mrb[0].mxu0 %vm331_vm0, %v329_v2  ;;  %s933_s18 = sshll.u32 %s323_s19, 3  ;;  %s807_s19 = sshll.u32 %s315_s16, 4  ;;  %s1434_s19 = int_to_ptr.vmem [resolvable:$true] %s807_s19 }
  0x56   : > { %1010 = vmatpush3.bf16.msra.mxu1 %v1007_v8  ;;  %s326_s20 = scalar_lea.vmem %s1480_s1, %s933_s18  ;;  %s1438_s28 = scalar_lea.sflag [#allocation4], %s313_s15 }
  0x57   : > { %v936_v11 = vld [vmem:[%s326_s20] sm:$0xff]   ;;  %s1148_s20 = scalar_lea.vmem %s1434_s19, 256  ;;  %p1499_p2 = scmp.ne.s32.totalorder %s1490_s11, 0 }
  0x58   : > { %v937_v12 = vunpack.c.l.bf16 %v936_v11  ;;  %v938_v20 = vunpack.c.h.bf16 %v936_v11  ;;  %p1149_p1 = scmp.ne.s32.totalorder %s1434_s19, %s1148_s20  ;;  %s1225_s21 = smov [#allocation7]  }
  0x59   : > { %s1152_s22 = sshll.u32 %s1225_s21, 4  ;;  %s1153_s22 = int_to_ptr.vmem [resolvable:$false] %s1152_s22 }
  0x5a   : > { %982 = vmatprep.mubr.msk.f32.mxu0 %vm510_vm2, %v937_v12  ;;  %p1150_p3 = pnand %p1149_p1, %p1499_p2  ;;  %p1155_p7 = scmp.lt.s32.totalorder %s1434_s19, %s1153_s22 }
  0x5c   : > { %p1151_p4 = pneg %p1150_p3 }
 0x128   : > { %v966_v9 = vpop.f32.mrb[0].mxu0 }
 0x129   : > { %v404_v10 = vpop.f32.mrb[1].mxu0 }
 0x12a   : > { %975 = vmatprep.mubr.msk.f32.mxu1 %vm418_vm1, %v404_v10 }
 0x12b   : > { %976 = vmatmul.mubr.msk.f32.vlgmr.msra.gmra.mrb[0].mxu1 %vm418_vm1, %v966_v9 }
 0x12c   : > { %1000 = vmatprep.mubr.msk.f32.mxu1 %vm510_vm2, %v937_v12 }
 0x1fe   : > { %v977_v14 = vpop.f32.mrb[0].mxu1 }
 0x1ff   : > { %v491_v15 = vpop.f32.mrb[1].mxu1  ;;  %v595_v18 = vadd.f32 %v977_v14, %v920_v13 }
 0x200   : > { %v1011_v16 = vpack.c.bf16 %v977_v14, %v491_v15  ;;  %v594_v17 = vadd.f32 %v920_v13, %v491_v15 }
 0x201   : > { %v597_v21 = vmax.f32 %v595_v18, 0.0 }
 0x202   : > { %1012 = vmatprep.subr.bf16.mxu0 %v1011_v16  ;;  %v596_v19 = vmax.f32 %v594_v17, 0.0 }
 0x203   : > { %1014 = vmatpush3.bf16.msra.mxu0 %v1011_v16 }
 0x204   : > { %600 = vrot.lane.b32.xlu0 %v596_v19, %s1224_s23  ;;  %1016 = vmatprep.subr.bf16.mxu0 %v1015_v24 }
 0x206   : > { %983 = vmatmul.mubr.msk.f32.vlgmr.msra.gmra.mrb[2].mxu0 %vm510_vm2, %v938_v20 }
 0x207   : > { %1018 = vmatpush3.bf16.msra.mxu0 %v1015_v24 }
 0x208   : > { %602 = vrot.lane.b32.xlu0 %v597_v21, %s1224_s23  ;;  %1020 = vmatprep.subr.bf16.mxu0 %v1019_v27 }
 0x20b   : > { %1022 = vmatpush3.bf16.msra.mxu0 %v1019_v27 }
 0x276   : > { %v601_v28 = vpop.permute.xlu0 %600 }
 0x27a   : > { %v603_v35 = vpop.permute.xlu0 %602 }
 0x2d9   : > { %v984_v29 = vpop.f32.mrb[2].mxu0 }
 0x2da   : > { %v589_v30 = vadd.f32 %v984_v29, %v920_v13  ;;  %v583_v31 = vpop.f32.mrb[3].mxu0 }
 0x2db   : > { %v584_v32 = vadd.f32 %v920_v13, %v583_v31 }
 0x2dc   : > { %v593_v33 = vmax.f32 %v589_v30, 0.0 }
 0x2dd   : > { %v592_v34 = vmax.f32 %v584_v32, 0.0 }
 0x2de   : > { %v607_v37 = vadd.f32 %v603_v35, %v593_v33 }
 0x2df   : > { %v606_v36 = vadd.f32 %v601_v28, %v592_v34 }
 0x2e1   : > { %993 = vmatprep.mubr.msk.f32.mxu0 %vm418_vm1, %v606_v36 }
 0x2e2   : > { %994 = vmatmul.mubr.msk.f32.vlgmr.msra.gmra.mrb[4].mxu0 %vm418_vm1, %v607_v37 }
 0x3b5   : > { %v995_v39 = vpop.f32.mrb[4].mxu0 }
 0x3b6   : > { %v685_v40 = vpop.f32.mrb[5].mxu0  ;;  %v778_v43 = vadd.f32 %v995_v39, %v925_v38 }
 0x3b7   : > { %v1023_v41 = vpack.c.bf16 %v995_v39, %v685_v40  ;;  %v777_v42 = vadd.f32 %v925_v38, %v685_v40 }
 0x3b8   : > { %v780_v45 = vmax.f32 %v778_v43, 0.0 }
 0x3b9   : > { %v779_v44 = vmax.f32 %v777_v42, 0.0  ;;  %1024 = vmatprep.subr.bf16.mxu1 %v1023_v41 }
 0x3ba   : > { %1026 = vmatpush3.bf16.msra.mxu1 %v1023_v41 }
 0x3bb   : > { %783 = vrot.lane.b32.xlu1 %v779_v44, %s1224_s23 }
 0x3bd   : > { %1001 = vmatmul.mubr.msk.f32.vlgmr.msra.gmra.mrb[2].mxu1 %vm510_vm2, %v938_v20 }
 0x3bf   : > { %785 = vrot.lane.b32.xlu1 %v780_v45, %s1224_s23  ;;  %s1154_s23 = scalar_lea.vmem %s1153_s22, 512 }
 0x3c0   : > { %p1156_p8 = scmp.lt.s32.totalorder %s1154_s23, %s1148_s20 }
 0x3c2   : > { %p1157_p11 = por %p1156_p8, %p1155_p7 }
 0x3c4   : > { %p1158_p13 = pnand %p1157_p11, %p1151_p4 }
 0x42d   : > { %v784_v46 = vpop.permute.xlu1 %783 }
 0x431   : > { %v786_v52 = vpop.permute.xlu1 %785 }
 0x490   : > { %v1002_v47 = vpop.f32.mrb[2].mxu1 }
 0x491   : > { %v772_v48 = vadd.f32 %v1002_v47, %v925_v38  ;;  %v766_v49 = vpop.f32.mrb[3].mxu1 }
 0x492   : > { %v767_v50 = vadd.f32 %v925_v38, %v766_v49 }
 0x493   : > { %v776_v51 = vmax.f32 %v772_v48, 0.0 }
 0x494   : > { %v775_v53 = vmax.f32 %v767_v50, 0.0 }
 0x495   : > { %v790_v54 = vadd.f32 %v786_v52, %v776_v51 }
 0x496   : > { %v789_v55 = vadd.f32 %v784_v46, %v775_v53 }
 0x497   : > { %792 = vst.msk [vmem:[%s315_s16 + $0x8] sm:$0xff] %vm418_vm1, %v790_v54 }
 0x498   : > { %791 = vst.msk [vmem:[%s315_s16] sm:$0xff] %vm418_vm1, %v789_v55 }
 0x499   : > { %1161 = shalt.err (!%p1158_p13)
}
 0x49a   : > { %s1162_s29 = scalar_lea.hbm %s1432_s13, 256  ;;  %s1166_s9 = scalar_lea.hbm %s1486_s7, 512 }
 0x49b   : > { %p1163_p0 = scmp.ne.s32.totalorder %s1432_s13, %s1162_s29  ;;  %p1167_p9 = scmp.lt.u32.totalorder %s1432_s13, %s1486_s7 }
 0x49c   : > { %p1168_p10 = scmp.lt.u32.totalorder %s1166_s9, %s1162_s29  ;;  %p1170_p1 = scmp.lt.u32.totalorder %s1162_s29, %s1432_s13 }
 0x49d   : > { %p1164_p6 = pnand %p1163_p0, %p1499_p2 }
 0x49e   : > { %p1169_p12 = por %p1168_p10, %p1167_p9 }
 0x49f   : > { %p1165_p5 = pneg %p1164_p6 }
 0x4a0   : > { %p1171_p3 = por %p1170_p1, %p1169_p12 }
 0x4a2   : > { %p1172_p4 = pnand %p1171_p3, %p1165_p5 }
 0x4a4   : > { %1175 = shalt.err (!%p1172_p4)
}
 0x4a5   : > { %s1226_s18 = smov 128   ;;  %s1227_s17 = smov 8  }
 0x4a6   : > { %1035 = dma.vmem_to_hbm [thread:$0]  (%p1499_p2), %s1434_s19, 256, %s1432_s13, %s1438_s28, %s1226_s18, %s1226_s18, %s1227_s17  }
 0x4a7 PF: > { %p1052_p7 = scmp.ge.s32.totalorder %s1218_s27, 2  ;;  %s822_s20 = sand.u32 1, %s1206_s24  }
 0x4a8   : > { %p1500_p8 = scmp.ne.s32.totalorder %s1491_s12, 0  ;;  %s823_s21 = scalar_lea.sflag [#allocation4], %s822_s20 }
 0x4aa   : > { %p1045_p11 = pnand %p1052_p7, %p1500_p8 }
 0x4ac   : > { %1201 = dma.done.wait (!%p1045_p11), %s823_s21, 256  }
 0x4ad   : > { %1203 = vsyncadd (!%p1045_p11), %s823_s21, 4294967040  ;;  %p19_p13 = scmp.ge.s32.totalorder %s1293_s30, 4   ;;  %s1501_s24 = smov %s1210_s25 }
 0x4ae   : > { %s1502_s25 = smov %s1214_s26  ;;  %s1503_s26 = smov %s1304_s10 }
 0x4af   : > { %s1504_s27 = smov %s1293_s30  ;;  %21 = sbr.rel (!%p19_p13) target bundleno = 5 (0x5), region = 95 }
 0x4b6   :  { %828 = vsyncpa [#allocation3], 1 }
 0x4b7   :  { %830 = vsyncpa [#allocation3 + $0x1], 1 }
 0x4b8   :  { %831 = vsyncpa [#allocation6], 1 }
 0x4b9   :  { %832 = vsyncpa [#allocation4], 1 }
 0x4ba   :  { %834 = vsyncpa [#allocation4 + $0x1], 1 }

</bundles_post_ra>
